<compile_context>
chip_gen: v7x
topology: tpu7x:2x2x1
jax: 0.10.0
libtpu: 0.0.40
codegen_flags: <defaults>
</compile_context>

<pallas_src>
import math

import jax
import jax.numpy as jnp
from jax.experimental import pallas as pl
from jax.experimental.pallas import tpu as pltpu

_TARGET_BLOCK_BYTES = 4 * 1024 * 1024      # ~4 MiB per block (all gens OK)
_MIN_SPLIT_BLOCK_BYTES = 512 * 1024        # never split into blocks smaller than this
_MIN_STEPS_WHEN_LARGE = 4                  # >= 2 steps per TensorCore on v7x
_VMEM_LIMIT_BYTES = 32 * 1024 * 1024       # in+out double-buffered 4 MiB blocks = 16 MiB


def _fadelu_kernel(params_ref, x_ref, o_ref):
    # params_ref lives in SMEM (scalar prefetch): [a, b, c, d] as f32.
    a = params_ref[0]
    b = params_ref[1]
    c = params_ref[2]
    d = params_ref[3]
    # Load in the I/O dtype, compute in f32 (no bf16 VPU/EUP on v5e).
    x = x_ref[...].astype(jnp.float32)
    delu = x * jnp.exp(-a * jnp.exp(-b * x))        # exp -> EUP
    y = delu + c * jnp.tanh(d * x)                  # tanh -> EUP
    o_ref[...] = y.astype(o_ref.dtype)


def _fadelu_jnp(x, params):
    xf = x.astype(jnp.float32)
    a, b, c, d = params[0], params[1], params[2], params[3]
    return xf * jnp.exp(-a * jnp.exp(-b * xf)) + c * jnp.tanh(d * xf)


def _pick_lanes(n, sublane_mult):
    # Wider lane dim -> fewer DMA descriptors / unmasked lane-dense stores,
    # but only if there is at least one full row-block at that width.
    for lanes in (512, 256, 128):
        if n >= sublane_mult * lanes:
            return lanes
    return 128


def _pick_tile_rows(rows_total, lanes, itemsize, sublane_mult):
    bytes_per_row = lanes * itemsize
    total_bytes = rows_total * bytes_per_row

    # Small / medium tensors: single block.  Forcing a split here is pure
    # per-step overhead on single-TC v5e/v6e and gives no pipelining anywhere.
    if total_bytes < _MIN_STEPS_WHEN_LARGE * _MIN_SPLIT_BLOCK_BYTES:
        return rows_total

    # Large tensors: target ~4 MiB blocks, but at least 4 (even) steps so that
    # after megacore sharding each v7x TensorCore still has >= 2 steps of
    # prefetch/writeback overlap, and the two cores stay balanced.
    steps = max(_MIN_STEPS_WHEN_LARGE, pl.cdiv(total_bytes, _TARGET_BLOCK_BYTES))
    steps += steps % 2
    tile_rows = pl.cdiv(rows_total, steps)
    tile_rows = pl.cdiv(tile_rows, sublane_mult) * sublane_mult
    return max(sublane_mult, tile_rows)


def fadelu(x, a=1.0, b=1.0, c=0.1, d=1.0):
    """FADELU forward: x * exp(-a*exp(-b*x)) + c*tanh(d*x), elementwise."""
    orig_shape = x.shape
    orig_dtype = x.dtype
    n = int(math.prod(orig_shape)) if orig_shape else 1

    # Trainable scalars -> small f32 array, delivered to SMEM via scalar
    # prefetch.  Works with Python floats or traced JAX scalars alike.
    params = jnp.stack([jnp.asarray(a, jnp.float32),
                        jnp.asarray(b, jnp.float32),
                        jnp.asarray(c, jnp.float32),
                        jnp.asarray(d, jnp.float32)])

    xf = x.reshape(-1)
    itemsize = jnp.dtype(orig_dtype).itemsize
    sublane_mult = max(8, 32 // max(1, itemsize))   # 8 f32 / 16 bf16 / 32 int8-fp8
    lanes = _pick_lanes(n, sublane_mult)
    chunk = sublane_mult * lanes

    n_main = (n // chunk) * chunk
    if n_main == 0:
        # Smaller than one aligned row-block: a kernel saves nothing here.
        out = _fadelu_jnp(xf, params).astype(orig_dtype)
        return out.reshape(orig_shape)

    x_main = xf if n_main == n else xf[:n_main]
    rows_total = n_main // lanes
    x2d = x_main.reshape(rows_total, lanes)

    tile_rows = _pick_tile_rows(rows_total, lanes, itemsize, sublane_mult)
    grid = (pl.cdiv(rows_total, tile_rows),)

    cost = pl.CostEstimate(
        flops=8 * n_main,
        transcendentals=3 * n_main,
        bytes_accessed=2 * n_main * itemsize + 16,
    )

    out2d = pl.pallas_call(
        _fadelu_kernel,
        out_shape=jax.ShapeDtypeStruct((rows_total, lanes), orig_dtype),
        grid_spec=pltpu.PrefetchScalarGridSpec(
            num_scalar_prefetch=1,
            grid=grid,
            in_specs=[pl.BlockSpec((tile_rows, lanes), lambda i, p: (i, 0))],
            out_specs=pl.BlockSpec((tile_rows, lanes), lambda i, p: (i, 0)),
        ),
        compiler_params=pltpu.CompilerParams(
            dimension_semantics=("parallel",),
            vmem_limit_bytes=_VMEM_LIMIT_BYTES,
        ),
        cost_estimate=cost,
    )(params, x2d)

    out = out2d.reshape(-1)
    if n_main != n:
        # Tail (< one row-block) in plain XLA -- avoids padding + re-slicing
        # the whole tensor (extra full HBM read+write passes).
        tail_out = _fadelu_jnp(xf[n_main:], params).astype(orig_dtype)
        out = jnp.concatenate([out, tail_out])
    return out.reshape(orig_shape)


def fadelu_ref(x, a=1.0, b=1.0, c=0.1, d=1.0):
    xf = x.astype(jnp.float32)
    y = xf * jnp.exp(-a * jnp.exp(-b * xf)) + c * jnp.tanh(d * xf)
    return y.astype(x.dtype)


if __name__ == "__main__":
    key = jax.random.PRNGKey(0)
    # Defaults of FADELU.__init__ (a, b, c, d are scalar nn.Parameters).
    a_p, b_p, c_p, d_p = 1.0, 1.0, 0.1, 1.0

    x = jax.random.normal(key, (2, 4, 16, 16), dtype=jnp.float32)

    y = fadelu(x, a_p, b_p, c_p, d_p)
    jax.block_until_ready(y)
    y_ref = fadelu_ref(x, a_p, b_p, c_p, d_p)
    assert y.shape == x.shape and y.dtype == x.dtype
    assert jnp.allclose(y, y_ref, rtol=1e-5, atol=1e-5)

    # Traced (trainable-parameter-like) scalars under jit: values can change
    # without recompiling and without ConcretizationTypeError.
    fadelu_jit = jax.jit(fadelu)
    p = (jnp.float32(1.2), jnp.float32(0.8), jnp.float32(0.25), jnp.float32(1.5))
    y2 = fadelu_jit(x, *p)
    jax.block_until_ready(y2)
    assert jnp.allclose(y2, fadelu_ref(x, *p), rtol=1e-5, atol=1e-5)

    # Unaligned flattened size: aligned prefix -> kernel, small tail -> XLA.
    x3 = jax.random.normal(jax.random.PRNGKey(1), (3, 500), dtype=jnp.float32)
    y3 = fadelu(x3, a_p, b_p, c_p, d_p)
    jax.block_until_ready(y3)
    assert jnp.allclose(y3, fadelu_ref(x3, a_p, b_p, c_p, d_p), rtol=1e-5, atol=1e-5)

    print("KERNEL_OK")
</pallas_src>

<mosaic_0001>
module attributes {stable_mosaic.version = 11 : i64} {
  func.func @_fadelu_kernel(%arg0: i32, %arg1: memref<4xf32, #tpu.memory_space<smem>>, %arg2: memref<8x256xf32, #tpu.memory_space<vmem>>, %arg3: memref<8x256xf32, #tpu.memory_space<vmem>>) attributes {dimension_semantics = [#tpu.dimension_semantics<parallel>], iteration_bounds = array<i64: 1>, scalar_prefetch = 1 : i64, scratch_operands = 0 : i64, tpu.core_type = #tpu.core_type<tc>, window_params = [{transform_indices = @transform_0, window_bounds = array<i64: 8, 256>}, {transform_indices = @transform_1, window_bounds = array<i64: 8, 256>}]} {
    %c0 = arith.constant 0 : index
    %0 = memref.load %arg1[%c0] : memref<4xf32, #tpu.memory_space<smem>>
    %c1 = arith.constant 1 : index
    %1 = memref.load %arg1[%c1] : memref<4xf32, #tpu.memory_space<smem>>
    %c2 = arith.constant 2 : index
    %2 = memref.load %arg1[%c2] : memref<4xf32, #tpu.memory_space<smem>>
    %c3 = arith.constant 3 : index
    %3 = memref.load %arg1[%c3] : memref<4xf32, #tpu.memory_space<smem>>
    %c0_0 = arith.constant 0 : index
    %c0_1 = arith.constant 0 : index
    %4 = vector.load %arg2[%c0_0, %c0_1] : memref<8x256xf32, #tpu.memory_space<vmem>>, vector<8x256xf32>
    %cst = arith.constant 0.000000e+00 : f32
    %5 = arith.subf %cst, %0 : f32
    %cst_2 = arith.constant 0.000000e+00 : f32
    %6 = arith.subf %cst_2, %1 : f32
    %7 = vector.broadcast %6 : f32 to vector<8x256xf32>
    %8 = arith.mulf %7, %4 : vector<8x256xf32>
    %9 = math.exp %8 : vector<8x256xf32>
    %10 = vector.broadcast %5 : f32 to vector<8x256xf32>
    %11 = arith.mulf %10, %9 : vector<8x256xf32>
    %12 = math.exp %11 : vector<8x256xf32>
    %13 = arith.mulf %4, %12 : vector<8x256xf32>
    %14 = vector.broadcast %3 : f32 to vector<8x256xf32>
    %15 = arith.mulf %14, %4 : vector<8x256xf32>
    %16 = math.tanh %15 : vector<8x256xf32>
    %17 = vector.broadcast %2 : f32 to vector<8x256xf32>
    %18 = arith.mulf %17, %16 : vector<8x256xf32>
    %19 = arith.addf %13, %18 : vector<8x256xf32>
    %c0_3 = arith.constant 0 : index
    %c0_4 = arith.constant 0 : index
    %20 = vector.load %arg3[%c0_3, %c0_4] : memref<8x256xf32, #tpu.memory_space<vmem>>, vector<8x256xf32>
    tpu.vector_store %arg3[%c0_3, %c0_4], %19 {strides = array<i32>} : memref<8x256xf32, #tpu.memory_space<vmem>>, vector<8x256xf32>,
    return
  }
  func.func @transform_0(%arg0: i32, %arg1: memref<4xf32, #tpu.memory_space<smem>>) -> (i32, i32) {
    %c0_i32 = arith.constant 0 : i32
    %c0_i32_0 = arith.constant 0 : i32
    return %arg0, %c0_i32 : i32, i32
  }
  func.func @transform_1(%arg0: i32, %arg1: memref<4xf32, #tpu.memory_space<smem>>) -> (i32, i32) {
    %c0_i32 = arith.constant 0 : i32
    %c0_i32_0 = arith.constant 0 : i32
    return %arg0, %c0_i32 : i32, i32
  }
}

</mosaic_0001>

<bundles_post_ra>
// kernel: tpu_custom_call.1
= control target key start
LH: loop header
LB: loop body
LE: loop exit
PB: predicated region body
PF: predicated region fallthrough
CT: control target
= control target key end

     0   :  { %s209_s0 = inlined_call_operand.hbm [shape: f32[4], index: 0, kind: input, shape index: {}]   ;;  %s210_s1 = inlined_call_operand.hbm [shape: f32[8,256], index: 1, kind: input, shape index: {}]   ;;  %s211_s2 = inlined_call_operand.hbm [shape: f32[8,256], index: 2, kind: output, shape index: {}]  }
   0x1   :  { %s95_s11 = scalar_lea.hbm %s209_s0, 16 }
   0x2   :  { %p96_p0 = scmp.ne.s32.totalorder %s209_s0, %s95_s11  ;;  %p99_p1 = scmp.lt.u32.totalorder %s95_s11, %s209_s0 }
   0x4   :  { %p101_p2 = pnand %p99_p1, %p96_p0 }
   0x6   :  { %104 = shalt.err (!%p101_p2)  }
   0x7   :  { %s155_s16 = smov [#allocation3]  }
   0x8   :  { %8 = dma.hbm_to_smem %s209_s0, 16, %s155_s16, [#allocation2] }
   0x9   :  { %149 = dma.done.wait [#allocation2], 16 }
   0xa   :  { %150 = vsyncadd [#allocation2], 4294967280 }
   0xb   :  { %10 = sfence }
   0xc   :  { %11 = vsyncpa [#allocation5], 0 }
   0xd   :  { %12 = vsyncpa [#allocation6], 0  ;;  %s156_s19 = smov [#allocation4]   ;;  %s105_s23 = scalar_lea.hbm %s210_s1, 256 }
   0xe   :  { %s19_s20 = sshll.u32 %s156_s19, 4  ;;  %p106_p3 = scmp.ne.s32.totalorder %s210_s1, %s105_s23  ;;  %s20_s20 = int_to_ptr.vmem [resolvable:$true] %s19_s20 }
   0xf   :  { %p109_p4 = scmp.lt.u32.totalorder %s105_s23, %s210_s1 }
  0x11   :  { %p111_p5 = pnand %p109_p4, %p106_p3 }
  0x13   :  { %114 = shalt.err (!%p111_p5)
}
  0x14   :  { %s115_s0 = scalar_lea.vmem %s20_s20, 256  ;;  %p120_p7 = scmp.lt.s32.totalorder %s20_s20, %s20_s20 }
  0x15   :  { %p116_p6 = scmp.ne.s32.totalorder %s20_s20, %s115_s0  ;;  %p121_p8 = scmp.lt.s32.totalorder %s115_s0, %s115_s0 }
  0x17   :  { %p122_p9 = por %p121_p8, %p120_p7 }
  0x19   :  { %p123_p10 = pnand %p122_p9, %p116_p6 }
  0x1b   :  { %126 = shalt.err (!%p123_p10)
}
  0x1c   :  { %22 = dma.hbm_to_vmem [thread:$0]  %s210_s1, 256, %s20_s20, [#allocation5]  }
  0x1d   :  { %151 = dma.done.wait [#allocation5], 256  }
  0x1e   :  { %152 = vsyncadd [#allocation5], 4294967040  ;;  %s77_s30 = sld [smem:[#allocation3 + $0x1]]  ;;  %v30_v0 = vld [vmem:[#allocation4] sm:$0xff]  ;;  %v31_v1 = vld [vmem:[#allocation4 + $0x8] sm:$0xff]  ;;  %s26_s4 = sld [smem:[#allocation3]] }
  0x1f   :  { %s79_s5 = sld [smem:[#allocation3 + $0x3]]  ;;  %s78_s1 = sld [smem:[#allocation3 + $0x2]] }
  0x20   :  { %s157_s7 = smov [#allocation7]  }
  0x21   :  { %s68_s8 = sshll.u32 %s157_s7, 4  ;;  %s69_s8 = int_to_ptr.vmem [resolvable:$true] %s68_s8 }
  0x22   :  { %s127_s9 = scalar_lea.vmem %s69_s8, 256  ;;  %p132_p12 = scmp.lt.s32.totalorder %s69_s8, %s69_s8 }
  0x23   :  { %p128_p11 = scmp.ne.s32.totalorder %s69_s8, %s127_s9  ;;  %p133_p13 = scmp.lt.s32.totalorder %s127_s9, %s127_s9 }
  0x24   :  { %s33_s3 = ssub.f32 0.0, %s77_s30 }
  0x25   :  { %s32_s6 = ssub.f32 0.0, %s26_s4  ;;  %v50_v7 = vstv %s79_s5  ;;  %v55_v18 = vstv %s78_s1  ;;  %p134_p0 = por %p133_p13, %p132_p12 }
  0x26   :  { %v34_v2 = vstv %s33_s3  ;;  %v51_v8 = vmul.f32 %v50_v7, %v30_v0  ;;  %v52_v10 = vmul.f32 %v50_v7, %v31_v1 }
  0x27   :  { %v35_v3 = vmul.f32 %v34_v2, %v30_v0  ;;  %v36_v4 = vmul.f32 %v34_v2, %v31_v1  ;;  %v41_v9 = vstv %s32_s6  ;;  %p135_p1 = pnand %p134_p0, %p128_p11 }
  0x29   :  { %v37_v5 = vmul.f32 1.442695, %v35_v3  ;;  %v39_v6 = vmul.f32 1.442695, %v36_v4 }
  0x2b   :  { %83 = vpow2.f32 %v37_v5 }
  0x2c   :  { %85 = vpow2.f32 %v39_v6 }
  0x2d   :  { %87 = vtanh.f32 %v51_v8 }
  0x2e   :  { %89 = vtanh.f32 %v52_v10 }
  0x35   :  { %v84_v11 = vpop.eup %83 }
  0x36   :  { %v86_v12 = vpop.eup %85  ;;  %v42_v13 = vmul.f32 %v84_v11, %v41_v9 }
  0x37   :  { %v43_v14 = vmul.f32 %v86_v12, %v41_v9  ;;  %v88_v17 = vpop.eup %87 }
  0x38   :  { %v44_v15 = vmul.f32 1.442695, %v42_v13  ;;  %v90_v19 = vpop.eup %89  ;;  %v56_v20 = vmul.f32 %v88_v17, %v55_v18 }
  0x39   :  { %v46_v16 = vmul.f32 1.442695, %v43_v14  ;;  %v57_v22 = vmul.f32 %v90_v19, %v55_v18 }
  0x3a   :  { %91 = vpow2.f32 %v44_v15 }
  0x3b   :  { %93 = vpow2.f32 %v46_v16 }
  0x44   :  { %v92_v21 = vpop.eup %91 }
  0x45   :  { %v94_v23 = vpop.eup %93  ;;  %v48_v24 = vmul.f32 %v92_v21, %v30_v0 }
  0x46   :  { %v49_v25 = vmul.f32 %v94_v23, %v31_v1 }
  0x47   :  { %v58_v26 = vadd.f32 %v56_v20, %v48_v24 }
  0x48   :  { %v59_v27 = vadd.f32 %v57_v22, %v49_v25 }
  0x49   :  { %60 = vst [vmem:[#allocation7] sm:$0xff] %v58_v26 }
  0x4a   :  { %61 = vst [vmem:[#allocation7 + $0x8] sm:$0xff] %v59_v27 }
  0x4b   :  { %138 = shalt.err (!%p135_p1)
}
  0x4c   :  { %s139_s12 = scalar_lea.hbm %s211_s2, 256 }
  0x4d   :  { %p140_p2 = scmp.ne.s32.totalorder %s211_s2, %s139_s12  ;;  %p143_p3 = scmp.lt.u32.totalorder %s139_s12, %s211_s2 }
  0x4f   :  { %p145_p4 = pnand %p143_p3, %p140_p2 }
  0x51   :  { %148 = shalt.err (!%p145_p4)
}
  0x52   :  { %71 = dma.vmem_to_hbm [thread:$0]  %s69_s8, 256, %s211_s2, [#allocation6]  }
  0x53   :  { %153 = dma.done.wait [#allocation6], 256  }
  0x54   :  { %154 = vsyncadd [#allocation6], 4294967040 }
  0x55   :  { %75 = vsyncpa [#allocation5], 1 }
  0x56   :  { %76 = vsyncpa [#allocation6], 1 }

</bundles_post_ra>
